<compile_context>
chip_gen: v5e
topology: v5e:2x2
jax: 0.10.0
libtpu: 0.0.40
codegen_flags: <defaults>
</compile_context>

<pallas_src>
import functools

import jax
import jax.numpy as jnp
from jax.experimental import pallas as pl
from jax.experimental.pallas import tpu as pltpu


def _sparse_dropout_kernel(vals_ref, bits_ref, out_ref, *, threshold, inv_kprob):
    # keep iff uniform-uint32 >= p * 2^32   (torch: keep iff rand >= p)
    keep = bits_ref[...] >= jnp.uint32(threshold)
    # Fused select + scale: 2 vector ops per element, no extra temporaries.
    out_ref[...] = vals_ref[...] * jnp.where(
        keep, jnp.float32(inv_kprob), jnp.float32(0.0))


def sparse_dropout(indices, values, dense_shape, *, p=0.5, key=None,
                   training=True, min_pallas_nnz=1024):
    """Dropout on a sparse COO tensor (indices int32[2, nnz], values f32[nnz])."""
    if not training or p <= 0.0:
        return indices, values, dense_shape
    if key is None:
        key = jax.random.PRNGKey(0)

    nnz = values.shape[0]
    kprob = 1.0 - p
    if kprob <= 0.0:  # p == 1: everything dropped
        return indices, jnp.zeros((nnz,), jnp.float32), dense_shape
    inv_kprob = 1.0 / kprob
    # uint32 threshold; clamp for p -> 1 saturation.
    threshold = min(int(round(p * 2.0 ** 32)), 2 ** 32 - 1)

    # Tiny problems: launch + pad overhead dominates -> plain jnp path.
    if nnz < min_pallas_nnz:
        bits = jax.random.bits(key, (nnz,), jnp.uint32)
        keep = bits >= jnp.uint32(threshold)
        new_values = values.astype(jnp.float32) * jnp.where(
            keep, jnp.float32(inv_kprob), jnp.float32(0.0))
        return indices, new_values, dense_shape

    LANES = 128
    MAX_TILE_ROWS = 512  # 512x128 f32 = 256 KiB per buffer
    rows_needed = pl.cdiv(nnz, LANES)
    if rows_needed <= MAX_TILE_ROWS:
        tile_r = max(8, 8 * pl.cdiv(rows_needed, 8))
        rows = tile_r
    else:
        tile_r = MAX_TILE_ROWS
        rows = tile_r * pl.cdiv(rows_needed, tile_r)
    padded = rows * LANES

    # Cheap pad (no scatter-into-zeros HBM pass), then lane-dense reshape.
    vals_2d = jnp.pad(values.astype(jnp.float32), (0, padded - nnz)).reshape(rows, LANES)
    bits_2d = jax.random.bits(key, (rows, LANES), jnp.uint32)

    kernel = functools.partial(
        _sparse_dropout_kernel, threshold=threshold, inv_kprob=float(inv_kprob))

    out_2d = pl.pallas_call(
        kernel,
        out_shape=jax.ShapeDtypeStruct((rows, LANES), jnp.float32),
        grid=(rows // tile_r,),
        in_specs=[
            pl.BlockSpec((tile_r, LANES), lambda i: (i, 0)),   # values tile
            pl.BlockSpec((tile_r, LANES), lambda i: (i, 0)),   # random-bits tile
        ],
        out_specs=pl.BlockSpec((tile_r, LANES), lambda i: (i, 0)),
        compiler_params=pltpu.CompilerParams(
            dimension_semantics=("parallel",)),
    )(vals_2d, bits_2d)

    new_values = out_2d.reshape(-1)[:nnz]
    # Indices untouched; dropped entries carry value 0.0.
    return indices, new_values, dense_shape


if __name__ == "__main__":
    key = jax.random.PRNGKey(0)
    k_idx_r, k_idx_c, k_val, k_drop = jax.random.split(key, 4)

    # Small sparse matrix: dense shape (64, 64), nnz = 4096 (exercises Pallas path).
    n_rows, n_cols, nnz = 64, 64, 4096
    rows_idx = jax.random.randint(k_idx_r, (nnz,), 0, n_rows, dtype=jnp.int32)
    cols_idx = jax.random.randint(k_idx_c, (nnz,), 0, n_cols, dtype=jnp.int32)
    indices = jnp.stack([rows_idx, cols_idx], axis=0)             # [2, nnz]
    values = jax.random.normal(k_val, (nnz,), dtype=jnp.float32)  # [nnz]

    p = 0.5
    out_idx, out_vals, out_shape = sparse_dropout(
        indices, values, (n_rows, n_cols), p=p, key=k_drop, training=True)
    jax.block_until_ready(out_vals)

    # Sanity: kept values are exactly values / kprob, dropped are exactly 0.
    kprob = 1.0 - p
    kept = out_vals != 0.0
    ok = bool(jnp.all(jnp.where(kept,
                                jnp.abs(out_vals - values / kprob) < 1e-5,
                                out_vals == 0.0)))
    assert ok, "dropout values mismatch"
    keep_frac = float(jnp.mean(kept.astype(jnp.float32)))
    assert 0.3 < keep_frac < 0.7, f"implausible keep fraction {keep_frac}"
    assert out_idx.shape == (2, nnz) and out_vals.shape == (nnz,)

    # Eval mode: identity.
    same_idx, same_vals, _ = sparse_dropout(
        indices, values, (n_rows, n_cols), p=p, key=k_drop, training=False)
    assert same_vals is values and same_idx is indices

    print("KERNEL_OK")
</pallas_src>

<mosaic_0001>
module attributes {stable_mosaic.version = 11 : i64} {
  func.func @_sparse_dropout_kernel(%arg0: i32, %arg1: memref<32x128xf32, #tpu.memory_space<vmem>>, %arg2: memref<32x128xi32, #tpu.memory_space<vmem>>, %arg3: memref<32x128xf32, #tpu.memory_space<vmem>>) attributes {dimension_semantics = [#tpu.dimension_semantics<parallel>], iteration_bounds = array<i64: 1>, scalar_prefetch = 0 : i64, scratch_operands = 0 : i64, tpu.core_type = #tpu.core_type<tc>, window_params = [{transform_indices = @transform_0, window_bounds = array<i64: 32, 128>}, {transform_indices = @transform_1, window_bounds = array<i64: 32, 128>}, {transform_indices = @transform_2, window_bounds = array<i64: 32, 128>}]} {
    %c0 = arith.constant 0 : index
    %c0_0 = arith.constant 0 : index
    %0 = vector.load %arg2[%c0, %c0_0] : memref<32x128xi32, #tpu.memory_space<vmem>>, vector<32x128xi32>
    %c-2147483648_i32 = arith.constant -2147483648 : i32
    %1 = vector.broadcast %c-2147483648_i32 : i32 to vector<32x128xi32>
    %2 = arith.cmpi uge, %0, %1 : vector<32x128xi32>
    %c0_1 = arith.constant 0 : index
    %c0_2 = arith.constant 0 : index
    %3 = vector.load %arg1[%c0_1, %c0_2] : memref<32x128xf32, #tpu.memory_space<vmem>>, vector<32x128xf32>
    %cst = arith.constant 2.000000e+00 : f32
    %cst_3 = arith.constant 0.000000e+00 : f32
    %4 = vector.broadcast %cst : f32 to vector<32x128xf32>
    %5 = vector.broadcast %cst_3 : f32 to vector<32x128xf32>
    %6 = arith.select %2, %4, %5 : vector<32x128xi1>, vector<32x128xf32>
    %7 = arith.mulf %3, %6 : vector<32x128xf32>
    %c0_4 = arith.constant 0 : index
    %c0_5 = arith.constant 0 : index
    %8 = vector.load %arg3[%c0_4, %c0_5] : memref<32x128xf32, #tpu.memory_space<vmem>>, vector<32x128xf32>
    tpu.vector_store %arg3[%c0_4, %c0_5], %7 {strides = array<i32>} : memref<32x128xf32, #tpu.memory_space<vmem>>, vector<32x128xf32>,
    return
  }
  func.func @transform_0(%arg0: i32) -> (i32, i32) {
    %c0_i32 = arith.constant 0 : i32
    %c0_i32_0 = arith.constant 0 : i32
    return %arg0, %c0_i32 : i32, i32
  }
  func.func @transform_1(%arg0: i32) -> (i32, i32) {
    %c0_i32 = arith.constant 0 : i32
    %c0_i32_0 = arith.constant 0 : i32
    return %arg0, %c0_i32 : i32, i32
  }
  func.func @transform_2(%arg0: i32) -> (i32, i32) {
    %c0_i32 = arith.constant 0 : i32
    %c0_i32_0 = arith.constant 0 : i32
    return %arg0, %c0_i32 : i32, i32
  }
}

</mosaic_0001>

<bundles_post_ra>
// kernel: tpu_custom_call.1
= control target key start
LH: loop header
LB: loop body
LE: loop exit
PB: predicated region body
PF: predicated region fallthrough
CT: control target
= control target key end

     0   :  { %7 = vsyncpa [#allocation3], 0  ;;  %s223_s0 = inlined_call_operand.hbm [shape: f32[32,128], index: 0, kind: input, shape index: {}]   ;;  %s224_s1 = inlined_call_operand.hbm [shape: u32[32,128], index: 1, kind: input, shape index: {}]   ;;  %s225_s2 = inlined_call_operand.hbm [shape: f32[32,128], index: 2, kind: output, shape index: {}]  }
   0x1   :  { %8 = vsyncpa [#allocation6], 0 }
   0x2   :  { %9 = vsyncpa [#allocation4], 0  ;;  %s14_s11 = sshll.u32 %s223_s0, 4  ;;  %s184_s12 = smov [#allocation2]   ;;  %s15_s11 = int_to_ptr.hbm [resolvable:$true] %s14_s11 }
   0x3   :  { %s16_s13 = sshll.u32 %s184_s12, 4  ;;  %s27_s16 = sshll.u32 %s224_s1, 4  ;;  %s17_s13 = int_to_ptr.vmem [resolvable:$true] %s16_s13  ;;  %s28_s16 = int_to_ptr.hbm [resolvable:$true] %s27_s16 }
   0x4   :  { %s185_s17 = smov 128   ;;  %s186_s18 = smov 8  }
   0x5   :  { %22 = dma.hbm_to_vmem [thread:$0]  %s15_s11, 512, %s17_s13, [#allocation3], %s185_s17, %s185_s17, %s186_s18  }
   0x6   :  { %s187_s19 = smov [#allocation5]  }
   0x7   :  { %s29_s20 = sshll.u32 %s187_s19, 4  ;;  %s30_s20 = int_to_ptr.vmem [resolvable:$true] %s29_s20 }
   0x8   :  { %35 = dma.hbm_to_vmem [thread:$0]  %s28_s16, 512, %s30_s20, [#allocation6], %s185_s17, %s185_s17, %s186_s18  }
   0x9   :  { %178 = dma.done.wait [#allocation3], 512  }
   0xa   :  { %179 = vsyncadd [#allocation3], 4294966784 }
   0xb   :  { %180 = dma.done.wait [#allocation6], 512  }
   0xc   :  { %181 = vsyncadd [#allocation6], 4294966784  ;;  %v44_v0 = vld [vmem:[#allocation5] sm:$0xff]  ;;  %v45_v1 = vld [vmem:[#allocation5 + $0x8] sm:$0xff]  ;;  %v188_v11 = vmov 0.0   ;;  %s189_s0 = smov [#allocation7]  }
   0xd   :  { %v96_v2 = vxor.u32 2147483648, %v44_v0  ;;  %v97_v3 = vxor.u32 2147483648, %v45_v1  ;;  %v46_v4 = vld [vmem:[#allocation5 + $0x10] sm:$0xff]  ;;  %v60_v5 = vld [vmem:[#allocation2] sm:$0xff]  ;;  %v61_v6 = vld [vmem:[#allocation2 + $0x8] sm:$0xff]  ;;  %s80_s1 = sshll.u32 %s189_s0, 4  ;;  %s81_s1 = int_to_ptr.vmem [resolvable:$true] %s80_s1 }
   0xe   :  { %v98_v7 = vxor.u32 2147483648, %v46_v4  ;;  %v47_v8 = vld [vmem:[#allocation5 + $0x18] sm:$0xff]  ;;  %v62_v9 = vld [vmem:[#allocation2 + $0x10] sm:$0xff]  ;;  %s82_s23 = sshll.u32 %s225_s2, 4  ;;  %s83_s23 = int_to_ptr.hbm [resolvable:$true] %s82_s23 }
   0xf   :  { %vm50_vm0 = vcmp.ge.s32.totalorder %v96_v2, 0  ;;  %vm53_vm1 = vcmp.ge.s32.totalorder %v97_v3, 0  ;;  %v99_v10 = vxor.u32 2147483648, %v47_v8  ;;  %v63_v14 = vld [vmem:[#allocation2 + $0x18] sm:$0xff] }
  0x10   :  { %v64_v12 = vsel %vm50_vm0, 2.0, %v188_v11  ;;  %v65_v13 = vsel %vm53_vm1, 2.0, %v188_v11  ;;  %vm56_vm2 = vcmp.ge.s32.totalorder %v98_v7, 0 }
  0x11   :  { %v68_v15 = vmul.f32 %v64_v12, %v60_v5  ;;  %v69_v16 = vmul.f32 %v65_v13, %v61_v6  ;;  %v66_v17 = vsel %vm56_vm2, 2.0, %v188_v11  ;;  %vm59_vm3 = vcmp.ge.s32.totalorder %v99_v10, 0 }
  0x12   :  { %v70_v18 = vmul.f32 %v66_v17, %v62_v9  ;;  %v67_v19 = vsel %vm59_vm3, 2.0, %v188_v11 }
  0x13   :  { %72 = vst [vmem:[#allocation7] sm:$0xff] %v68_v15  ;;  %v71_v20 = vmul.f32 %v67_v19, %v63_v14 }
  0x14   :  { %73 = vst [vmem:[#allocation7 + $0x8] sm:$0xff] %v69_v16 }
  0x15   :  { %74 = vst [vmem:[#allocation7 + $0x10] sm:$0xff] %v70_v18 }
  0x16   :  { %75 = vst [vmem:[#allocation7 + $0x18] sm:$0xff] %v71_v20 }
  0x17   :  { %88 = dma.vmem_to_hbm [thread:$0]  %s81_s1, 512, %s83_s23, [#allocation4], %s185_s17, %s185_s17, %s186_s18  }
  0x18   :  { %182 = dma.done.wait [#allocation4], 512  }
  0x19   :  { %183 = vsyncadd [#allocation4], 4294966784 }
  0x1a   :  { %93 = vsyncpa [#allocation3], 1 }
  0x1b   :  { %94 = vsyncpa [#allocation6], 1 }
  0x1c   :  { %95 = vsyncpa [#allocation4], 1 }

</bundles_post_ra>
